<compile_context>
chip_gen: v7x
topology: tpu7x:2x2x1
jax: 0.10.0
libtpu: 0.0.40
codegen_flags: <defaults>
</compile_context>

<pallas_src>
import functools
import math

import jax
import jax.numpy as jnp
from jax.experimental import pallas as pl
from jax.experimental.pallas import tpu as pltpu


# ---------------------------------------------------------------------------
# Kernel
# ---------------------------------------------------------------------------

def router_kernel(x_ref, w1_ref, b1_ref, w2_ref, b2_ref, o_ref, acc_ref, *,
                  inv_s, fold, d):
    # x_ref : (tb, ts, fold*d)  streamed x slab (lane-folded when d < 128)
    # w1/w2 : (d, d)            VMEM-resident weights (native dtype)
    # b1/b2 : (1, d)
    # o_ref : (tb, d)
    # acc_ref: (tb, fold*d) f32 scratch; persists across the S ("arbitrary") axis
    s = pl.program_id(1)

    @pl.when(s == 0)
    def _init():
        acc_ref[...] = jnp.zeros_like(acc_ref)

    # Partial sum over this S slab, accumulated in f32 on the VPU.  The 1/S
    # scale is deferred to the finalize step (one multiply instead of S).
    acc_ref[...] += jnp.sum(x_ref[...].astype(jnp.float32), axis=1)

    @pl.when(s == pl.num_programs(1) - 1)
    def _finalize():
        acc = acc_ref[...]
        # Un-fold: the lane dim carries `fold` consecutive S rows of width d;
        # reduce them once per output block (static unrolled adds).
        m = acc[:, 0:d]
        for i in range(1, fold):
            m = m + acc[:, i * d:(i + 1) * d]
        m = m * inv_s                                                # mean over S

        # Feed the MXU in the weights' native dtype; accumulate in f32.
        h = jnp.dot(m.astype(w1_ref.dtype), w1_ref[...],
                    preferred_element_type=jnp.float32)
        h = jnp.maximum(h + b1_ref[...].astype(jnp.float32), 0.0)    # Linear1+ReLU
        y = jnp.dot(h.astype(w2_ref.dtype), w2_ref[...],
                    preferred_element_type=jnp.float32)
        y = y + b2_ref[...].astype(jnp.float32)                      # Linear2
        o_ref[...] = jnp.maximum(jnp.tanh(y), 0.0).astype(o_ref.dtype)  # relu(tanh)


# ---------------------------------------------------------------------------
# Tiling helpers
# ---------------------------------------------------------------------------

def _round_up(n, m):
    return ((n + m - 1) // m) * m


def _round_down(n, m):
    return (n // m) * m


def _largest_divisor(n, limit, quantum=1):
    """Largest d with n % d == 0, d <= limit, d % quantum == 0 (0 if none)."""
    limit = min(limit, n)
    best = 0
    d = 1
    while d * d <= n:
        if n % d == 0:
            for c in (d, n // d):
                if c <= limit and c % quantum == 0 and c > best:
                    best = c
        d += 1
    return best


def _vmem_capacity_bytes():
    """Per-core physical VMEM (generation-aware); conservative fallback."""
    try:
        cap = int(pltpu.get_tpu_info().vmem_capacity_bytes)
        return max(32 << 20, min(cap, 128 << 20))
    except Exception:
        return 64 << 20  # v7x is the smallest current generation (64 MiB / TC)


def _fold_factor(S, D):
    """Fold consecutive S rows into lanes so the streamed last dim is a
    multiple of 128 (full-lane DMAs, no padding bloat for small D)."""
    if D >= 128 or D % 128 == 0:
        return 1
    k = 128 // math.gcd(D, 128)
    if k > 1 and S % k == 0 and k * D <= 1024:
        return k
    return 1


# ---------------------------------------------------------------------------
# Wrapper
# ---------------------------------------------------------------------------

def router_forward(x, w1, b1, w2, b2):
    B, S, D = x.shape
    itemsize = x.dtype.itemsize
    out_dtype = x.dtype

    lane = lambda n: _round_up(n, 128)
    sub = lambda n: _round_up(n, 8)

    # ---- lane folding for small D -----------------------------------------
    fold = _fold_factor(S, D)
    Sf, Df = S // fold, fold * D
    xf = x.reshape(B, Sf, Df) if fold > 1 else x   # free row-major view

    # ---- tb: full batch for small B; otherwise a multiple-of-8 divisor.
    # Keep nb >= 2 for large B so the "parallel" B axis has blocks to shard
    # across the two TensorCores on v7x (harmless on single-TC v5e/v6e).
    if B <= 16:
        tb = B
    else:
        cap_tb = min(256, B)
        if B >= 32:
            cap_tb = min(cap_tb, max(8, _round_down(B // 2, 8)))
        tb = _largest_divisor(B, cap_tb, quantum=8) or B

    # ---- VMEM-budget-driven ts ---------------------------------------------
    vmem_cap = _vmem_capacity_bytes()
    usable = int(vmem_cap * 0.85)          # headroom for Mosaic internals

    def fixed_bytes(tb_):
        # Pallas double-buffers every BlockSpec'd operand (weights, biases,
        # output), so count them twice; acc scratch is single.
        w_blk = sub(D) * lane(D) * w1.dtype.itemsize
        b_blk = 8 * lane(D) * b1.dtype.itemsize
        out_blk = sub(tb_) * lane(D) * out_dtype.itemsize
        acc_blk = sub(tb_) * lane(Df) * 4
        return 2 * 2 * w_blk + 2 * 2 * b_blk + 2 * out_blk + acc_blk

    row_bytes = lane(Df) * itemsize        # bytes of one ts-row of one batch row
    slab_budget = (usable - fixed_bytes(tb)) // 2
    # If even an 8-row slab does not fit, shrink tb (keeping a multiple-of-8
    # divisor of B) before shrinking ts.
    while slab_budget < 8 * tb * row_bytes:
        smaller = _largest_divisor(B, tb // 2, quantum=8)
        if not smaller or smaller == tb:
            break
        tb = smaller
        slab_budget = (usable - fixed_bytes(tb)) // 2

    max_rows = max(slab_budget // max(tb * row_bytes, 1), 1)
    pad_s = 0
    if Sf <= max_rows:
        ts = Sf
    else:
        ts = _largest_divisor(Sf, max_rows, quantum=8)
        if ts == 0 or tb * ts * row_bytes < min(2 << 20, max(slab_budget // 4, 1)):
            # Awkward divisors (prime-ish S): zero-pad S to a friendly tile
            # instead of cratering to tiny slabs.  Zeros add nothing to the
            # sum and inv_s uses the true S, so the mean stays exact.
            ts = max(8, _round_down(min(max_rows, 4096), 8))
            pad_s = _round_up(Sf, ts) - Sf

    if pad_s:
        xf = jnp.pad(xf, ((0, 0), (0, pad_s), (0, 0)))
        Sf = Sf + pad_s

    nb = B // tb
    ns = Sf // ts

    # ---- x BlockSpec: deepen prefetch only in the small-slab regime --------
    x_slab_bytes = tb * sub(ts) * lane(Df) * itemsize
    if ns >= 4 and x_slab_bytes < (2 << 20):
        x_spec = pl.BlockSpec((tb, ts, Df), lambda b, s: (b, s, 0),
                              pipeline_mode=pl.Buffered(3))
        n_xbuf = 3
    else:
        x_spec = pl.BlockSpec((tb, ts, Df), lambda b, s: (b, s, 0))
        n_xbuf = 2

    vmem_need = n_xbuf * x_slab_bytes + fixed_bytes(tb)
    vmem_limit = max(min(int(vmem_cap * 0.92), vmem_need + (4 << 20)), 16 << 20)

    kernel = functools.partial(router_kernel, inv_s=1.0 / S, fold=fold, d=D)

    # Advisory cost hint so XLA schedules this mem-bound call sensibly.
    cost = pl.CostEstimate(
        flops=2 * 2 * B * D * D + B * S * D,
        transcendentals=B * D,
        bytes_accessed=(B * S * D * itemsize
                        + 2 * D * D * w1.dtype.itemsize
                        + 2 * D * b1.dtype.itemsize
                        + B * D * itemsize),
    )

    return pl.pallas_call(
        kernel,
        out_shape=jax.ShapeDtypeStruct((B, D), out_dtype),
        grid_spec=pltpu.PrefetchScalarGridSpec(
            num_scalar_prefetch=0,
            grid=(nb, ns),
            in_specs=[
                # Streamed, double-buffered x slabs (lane-folded for small D).
                x_spec,
                # Weights/biases: constant block index -> loaded once, stay
                # VMEM-resident across the entire grid.
                pl.BlockSpec((D, D), lambda b, s: (0, 0)),
                pl.BlockSpec((1, D), lambda b, s: (0, 0)),
                pl.BlockSpec((D, D), lambda b, s: (0, 0)),
                pl.BlockSpec((1, D), lambda b, s: (0, 0)),
            ],
            out_specs=pl.BlockSpec((tb, D), lambda b, s: (b, 0)),
            scratch_shapes=[pltpu.VMEM((tb, Df), jnp.float32)],
        ),
        compiler_params=pltpu.CompilerParams(
            dimension_semantics=("parallel", "arbitrary"),
            vmem_limit_bytes=int(vmem_limit),
        ),
        cost_estimate=cost,
    )(xf, w1, b1, w2, b2)


# ---------------------------------------------------------------------------
# Parameters / reference
# ---------------------------------------------------------------------------

def init_params(key, embed_dim):
    """Deterministic synthetic parameters matching Router.__init__ shapes."""
    k1, k2, k3 = jax.random.split(key, 3)
    scale = 1.0 / jnp.sqrt(embed_dim)
    # Stored as (in_dim, out_dim); equivalent to PyTorch weight.T
    w1 = jax.random.uniform(k1, (embed_dim, embed_dim), jnp.float32, -scale, scale)
    b1 = jax.random.uniform(k2, (1, embed_dim), jnp.float32, -scale, scale)
    w2 = jax.random.uniform(k3, (embed_dim, embed_dim), jnp.float32, -scale, scale)
    # Router.init_weights(): second linear bias filled with 1.5
    b2 = jnp.full((1, embed_dim), 1.5, dtype=jnp.float32)
    return w1, b1, w2, b2


def router_reference(x, w1, b1, w2, b2):
    m = jnp.mean(x.astype(jnp.float32), axis=-2)
    h = jnp.maximum(m @ w1 + b1, 0.0)
    y = h @ w2 + b2
    return jnp.maximum(jnp.tanh(y), 0.0).astype(x.dtype)


if __name__ == "__main__":
    B, S, D = 2, 8, 32  # batch, seq, embed_dim
    key = jax.random.PRNGKey(0)
    kx, kp = jax.random.split(key)
    x = jax.random.normal(kx, (B, S, D), dtype=jnp.float32)
    w1, b1, w2, b2 = init_params(kp, D)

    out = router_forward(x, w1, b1, w2, b2)
    out = jax.block_until_ready(out)

    ref = router_reference(x, w1, b1, w2, b2)
    assert out.shape == (B, D)
    assert jnp.allclose(out, ref, atol=1e-5, rtol=1e-5)

    print("KERNEL_OK")
</pallas_src>

<mosaic_0001>
module attributes {stable_mosaic.version = 11 : i64} {
  func.func @router_kernel(%arg0: i32, %arg1: i32, %arg2: memref<2x2x128xf32, #tpu.memory_space<vmem>>, %arg3: memref<32x32xf32, #tpu.memory_space<vmem>>, %arg4: memref<1x32xf32, #tpu.memory_space<vmem>>, %arg5: memref<32x32xf32, #tpu.memory_space<vmem>>, %arg6: memref<1x32xf32, #tpu.memory_space<vmem>>, %arg7: memref<2x32xf32, #tpu.memory_space<vmem>>, %arg8: memref<2x128xf32, #tpu.memory_space<vmem>>) attributes {dimension_semantics = [#tpu.dimension_semantics<parallel>, #tpu.dimension_semantics<arbitrary>], iteration_bounds = array<i64: 1, 1>, scalar_prefetch = 0 : i64, scratch_operands = 1 : i64, tpu.core_type = #tpu.core_type<tc>, window_params = [{transform_indices = @transform_0, window_bounds = array<i64: 2, 2, 128>}, {pipeline_mode = #tpu.pipeline_mode<synchronous>, transform_indices = @transform_1, window_bounds = array<i64: 32, 32>}, {pipeline_mode = #tpu.pipeline_mode<synchronous>, transform_indices = @transform_2, window_bounds = array<i64: 1, 32>}, {pipeline_mode = #tpu.pipeline_mode<synchronous>, transform_indices = @transform_3, window_bounds = array<i64: 32, 32>}, {pipeline_mode = #tpu.pipeline_mode<synchronous>, transform_indices = @transform_4, window_bounds = array<i64: 1, 32>}, {transform_indices = @transform_5, window_bounds = array<i64: 2, 32>}]} {
    %c0_i32 = arith.constant 0 : i32
    %0 = arith.cmpi eq, %arg1, %c0_i32 : i32
    %1 = arith.extui %0 : i1 to i32
    %c0_i32_0 = arith.constant 0 : i32
    %2 = arith.cmpi ne, %1, %c0_i32_0 : i32
    scf.if %2 {
      %cst_9 = arith.constant 0.000000e+00 : f32
      %11 = vector.broadcast %cst_9 : f32 to vector<2x128xf32>
      %c0_10 = arith.constant 0 : index
      %c0_11 = arith.constant 0 : index
      %12 = vector.load %arg8[%c0_10, %c0_11] : memref<2x128xf32, #tpu.memory_space<vmem>>, vector<2x128xf32>
      tpu.vector_store %arg8[%c0_10, %c0_11], %11 {strides = array<i32>} : memref<2x128xf32, #tpu.memory_space<vmem>>, vector<2x128xf32>,
    } else {
    }
    %c0 = arith.constant 0 : index
    %c0_1 = arith.constant 0 : index
    %3 = vector.load %arg8[%c0, %c0_1] : memref<2x128xf32, #tpu.memory_space<vmem>>, vector<2x128xf32>
    %c0_2 = arith.constant 0 : index
    %c0_3 = arith.constant 0 : index
    %c0_4 = arith.constant 0 : index
    %4 = vector.load %arg2[%c0_2, %c0_3, %c0_4] : memref<2x2x128xf32, #tpu.memory_space<vmem>>, vector<2x2x128xf32>
    %cst = arith.constant dense<0.000000e+00> : vector<2x128xf32>
    %5 = vector.multi_reduction <add>, %4, %cst [1] : vector<2x2x128xf32> to vector<2x128xf32>
    %6 = arith.addf %3, %5 : vector<2x128xf32>
    %c0_5 = arith.constant 0 : index
    %c0_6 = arith.constant 0 : index
    %7 = vector.load %arg8[%c0_5, %c0_6] : memref<2x128xf32, #tpu.memory_space<vmem>>, vector<2x128xf32>
    tpu.vector_store %arg8[%c0_5, %c0_6], %6 {strides = array<i32>} : memref<2x128xf32, #tpu.memory_space<vmem>>, vector<2x128xf32>,
    %c0_i32_7 = arith.constant 0 : i32
    %8 = arith.cmpi eq, %arg1, %c0_i32_7 : i32
    %9 = arith.extui %8 : i1 to i32
    %c0_i32_8 = arith.constant 0 : i32
    %10 = arith.cmpi ne, %9, %c0_i32_8 : i32
    scf.if %10 {
      %c0_9 = arith.constant 0 : index
      %c0_10 = arith.constant 0 : index
      %11 = vector.load %arg8[%c0_9, %c0_10] : memref<2x128xf32, #tpu.memory_space<vmem>>, vector<2x128xf32>
      %12 = vector.extract_strided_slice %11 {offsets = [0, 0], sizes = [2, 32], strides = [1, 1]} : vector<2x128xf32> to vector<2x32xf32>
      %13 = vector.extract_strided_slice %11 {offsets = [0, 32], sizes = [2, 32], strides = [1, 1]} : vector<2x128xf32> to vector<2x32xf32>
      %14 = arith.addf %12, %13 : vector<2x32xf32>
      %15 = vector.extract_strided_slice %11 {offsets = [0, 64], sizes = [2, 32], strides = [1, 1]} : vector<2x128xf32> to vector<2x32xf32>
      %16 = arith.addf %14, %15 : vector<2x32xf32>
      %17 = vector.extract_strided_slice %11 {offsets = [0, 96], sizes = [2, 32], strides = [1, 1]} : vector<2x128xf32> to vector<2x32xf32>
      %18 = arith.addf %16, %17 : vector<2x32xf32>
      %cst_11 = arith.constant 1.250000e-01 : f32
      %19 = vector.broadcast %cst_11 : f32 to vector<2x32xf32>
      %20 = arith.mulf %18, %19 : vector<2x32xf32>
      %c0_12 = arith.constant 0 : index
      %c0_13 = arith.constant 0 : index
      %21 = vector.load %arg3[%c0_12, %c0_13] : memref<32x32xf32, #tpu.memory_space<vmem>>, vector<32x32xf32>
      %cst_14 = arith.constant dense<0.000000e+00> : vector<2x32xf32>
      %22 = tpu.matmul %20, %21, %cst_14 {dimension_numbers = #tpu.dot_dimension_numbers<[1], [0], [0], [1], [0, 0, 1, 1], [], []>} : vector<2x32xf32>, vector<32x32xf32>, vector<2x32xf32> -> vector<2x32xf32>
      %c0_15 = arith.constant 0 : index
      %c0_16 = arith.constant 0 : index
      %23 = vector.load %arg4[%c0_15, %c0_16] : memref<1x32xf32, #tpu.memory_space<vmem>>, vector<1x32xf32>
      %24 = vector.broadcast %23 : vector<1x32xf32> to vector<2x32xf32>
      %25 = arith.addf %22, %24 : vector<2x32xf32>
      %cst_17 = arith.constant 0.000000e+00 : f32
      %26 = vector.broadcast %cst_17 : f32 to vector<2x32xf32>
      %27 = arith.maximumf %25, %26 : vector<2x32xf32>
      %c0_18 = arith.constant 0 : index
      %c0_19 = arith.constant 0 : index
      %28 = vector.load %arg5[%c0_18, %c0_19] : memref<32x32xf32, #tpu.memory_space<vmem>>, vector<32x32xf32>
      %cst_20 = arith.constant dense<0.000000e+00> : vector<2x32xf32>
      %29 = tpu.matmul %27, %28, %cst_20 {dimension_numbers = #tpu.dot_dimension_numbers<[1], [0], [0], [1], [0, 0, 1, 1], [], []>} : vector<2x32xf32>, vector<32x32xf32>, vector<2x32xf32> -> vector<2x32xf32>
      %c0_21 = arith.constant 0 : index
      %c0_22 = arith.constant 0 : index
      %30 = vector.load %arg6[%c0_21, %c0_22] : memref<1x32xf32, #tpu.memory_space<vmem>>, vector<1x32xf32>
      %31 = vector.broadcast %30 : vector<1x32xf32> to vector<2x32xf32>
      %32 = arith.addf %29, %31 : vector<2x32xf32>
      %33 = math.tanh %32 : vector<2x32xf32>
      %cst_23 = arith.constant 0.000000e+00 : f32
      %34 = vector.broadcast %cst_23 : f32 to vector<2x32xf32>
      %35 = arith.maximumf %33, %34 : vector<2x32xf32>
      %c0_24 = arith.constant 0 : index
      %c0_25 = arith.constant 0 : index
      %36 = vector.load %arg7[%c0_24, %c0_25] : memref<2x32xf32, #tpu.memory_space<vmem>>, vector<2x32xf32>
      tpu.vector_store %arg7[%c0_24, %c0_25], %35 {strides = array<i32>} : memref<2x32xf32, #tpu.memory_space<vmem>>, vector<2x32xf32>,
    } else {
    }
    return
  }
  func.func @transform_0(%arg0: i32, %arg1: i32) -> (i32, i32, i32) {
    %c0_i32 = arith.constant 0 : i32
    %c0_i32_0 = arith.constant 0 : i32
    return %arg0, %arg1, %c0_i32 : i32, i32, i32
  }
  func.func @transform_1(%arg0: i32, %arg1: i32) -> (i32, i32) {
    %c0_i32 = arith.constant 0 : i32
    %c0_i32_0 = arith.constant 0 : i32
    %c0_i32_1 = arith.constant 0 : i32
    return %c0_i32, %c0_i32_0 : i32, i32
  }
  func.func @transform_2(%arg0: i32, %arg1: i32) -> (i32, i32) {
    %c0_i32 = arith.constant 0 : i32
    %c0_i32_0 = arith.constant 0 : i32
    %c0_i32_1 = arith.constant 0 : i32
    return %c0_i32, %c0_i32_0 : i32, i32
  }
  func.func @transform_3(%arg0: i32, %arg1: i32) -> (i32, i32) {
    %c0_i32 = arith.constant 0 : i32
    %c0_i32_0 = arith.constant 0 : i32
    %c0_i32_1 = arith.constant 0 : i32
    return %c0_i32, %c0_i32_0 : i32, i32
  }
  func.func @transform_4(%arg0: i32, %arg1: i32) -> (i32, i32) {
    %c0_i32 = arith.constant 0 : i32
    %c0_i32_0 = arith.constant 0 : i32
    %c0_i32_1 = arith.constant 0 : i32
    return %c0_i32, %c0_i32_0 : i32, i32
  }
  func.func @transform_5(%arg0: i32, %arg1: i32) -> (i32, i32) {
    %c0_i32 = arith.constant 0 : i32
    %c0_i32_0 = arith.constant 0 : i32
    return %arg0, %c0_i32 : i32, i32
  }
}

</mosaic_0001>

<bundles_post_ra>
// kernel: tpu_custom_call.1
= control target key start
LH: loop header
LB: loop body
LE: loop exit
PB: predicated region body
PF: predicated region fallthrough
CT: control target
= control target key end

     0   :  { %10 = vsyncpa [#allocation4], 0  ;;  %s563_s0 = inlined_call_operand.hbm [shape: f32[2,2,128], index: 0, kind: input, shape index: {}]   ;;  %s564_s1 = inlined_call_operand.hbm [shape: f32[32,32], index: 1, kind: input, shape index: {}]   ;;  %s565_s2 = inlined_call_operand.vmem [shape: f32[1,32], index: 2, kind: input, shape index: {}]   ;;  %s566_s3 = inlined_call_operand.hbm [shape: f32[32,32], index: 3, kind: input, shape index: {}]   ;;  %s567_s4 = inlined_call_operand.vmem [shape: f32[1,32], index: 4, kind: input, shape index: {}]   ;;  %s568_s5 = inlined_call_operand.hbm [shape: f32[2,32], index: 5, kind: output, shape index: {}]  }
   0x1   :  { %11 = vsyncpa [#allocation7], 0 }
   0x2   :  { %12 = vsyncpa [#allocation5], 0  ;;  %s457_s18 = smov [#allocation6]   ;;  %s363_s22 = scalar_lea.hbm %s564_s1, 512 }
   0x3   :  { %s30_s19 = sshll.u32 %s457_s18, 4  ;;  %p364_p0 = scmp.ne.s32.totalorder %s564_s1, %s363_s22  ;;  %s31_s19 = int_to_ptr.vmem [resolvable:$true] %s30_s19 }
   0x4   :  { %p367_p1 = scmp.lt.u32.totalorder %s363_s22, %s564_s1 }
   0x6   :  { %p369_p2 = pnand %p367_p1, %p364_p0 }
   0x8   :  { %372 = shalt.err (!%p369_p2)
}
   0x9   :  { %s373_s27 = scalar_lea.vmem %s31_s19, 512  ;;  %p378_p4 = scmp.lt.s32.totalorder %s31_s19, %s31_s19 }
   0xa   :  { %p374_p3 = scmp.ne.s32.totalorder %s31_s19, %s373_s27  ;;  %p379_p5 = scmp.lt.s32.totalorder %s373_s27, %s373_s27 }
   0xc   :  { %p380_p6 = por %p379_p5, %p378_p4 }
   0xe   :  { %p381_p7 = pnand %p380_p6, %p374_p3 }
  0x10   :  { %384 = shalt.err (!%p381_p7)
}
  0x11   :  { %s458_s28 = smov 128   ;;  %s459_s29 = smov 8  }
  0x12   :  { %36 = dma.hbm_to_vmem [thread:$0]  %s564_s1, 512, %s31_s19, [#allocation7], %s458_s28, %s458_s28, %s459_s29  }
  0x13   :  { %s460_s7 = smov [#allocation3]   ;;  %s385_s11 = scalar_lea.hbm %s563_s0, 64 }
  0x14   :  { %s18_s8 = sshll.u32 %s460_s7, 4  ;;  %p386_p8 = scmp.ne.s32.totalorder %s563_s0, %s385_s11  ;;  %s19_s8 = int_to_ptr.vmem [resolvable:$true] %s18_s8 }
  0x15   :  { %p389_p9 = scmp.lt.u32.totalorder %s385_s11, %s563_s0 }
  0x17   :  { %p391_p10 = pnand %p389_p9, %p386_p8 }
  0x19   :  { %394 = shalt.err (!%p391_p10)
}
  0x1a   :  { %s395_s16 = scalar_lea.vmem %s19_s8, 64  ;;  %p400_p12 = scmp.lt.s32.totalorder %s19_s8, %s19_s8 }
  0x1b   :  { %p396_p11 = scmp.ne.s32.totalorder %s19_s8, %s395_s16  ;;  %p401_p13 = scmp.lt.s32.totalorder %s395_s16, %s395_s16 }
  0x1d   :  { %p402_p0 = por %p401_p13, %p400_p12 }
  0x1f   :  { %p403_p1 = pnand %p402_p0, %p396_p11 }
  0x21   :  { %406 = shalt.err (!%p403_p1)
}
  0x22   :  { %s461_s1 = smov 32   ;;  %s462_s17 = smov 2  }
  0x23   :  { %24 = dma.hbm_to_vmem [thread:$0]  %s563_s0, 64, %s19_s8, [#allocation4], %s461_s1, %s461_s1, %s462_s17  }
  0x24   :  { %s463_s20 = smov [#allocation8]   ;;  %s407_s24 = scalar_lea.hbm %s566_s3, 512 }
  0x25   :  { %s44_s21 = sshll.u32 %s463_s20, 4  ;;  %p408_p2 = scmp.ne.s32.totalorder %s566_s3, %s407_s24  ;;  %s45_s21 = int_to_ptr.vmem [resolvable:$true] %s44_s21 }
  0x26   :  { %p411_p3 = scmp.lt.u32.totalorder %s407_s24, %s566_s3 }
  0x28   :  { %p413_p4 = pnand %p411_p3, %p408_p2 }
  0x2a   :  { %416 = shalt.err (!%p413_p4)
}
  0x2b   :  { %s417_s6 = scalar_lea.vmem %s45_s21, 512  ;;  %p422_p6 = scmp.lt.s32.totalorder %s45_s21, %s45_s21 }
  0x2c   :  { %p418_p5 = scmp.ne.s32.totalorder %s45_s21, %s417_s6  ;;  %p423_p7 = scmp.lt.s32.totalorder %s417_s6, %s417_s6 }
  0x2e   :  { %p424_p8 = por %p423_p7, %p422_p6 }
  0x30   :  { %p425_p9 = pnand %p424_p8, %p418_p5 }
  0x32   :  { %428 = shalt.err (!%p425_p9)
}
  0x33   :  { %50 = dma.hbm_to_vmem [thread:$0]  %s566_s3, 512, %s45_s21, [#allocation7], %s458_s28, %s458_s28, %s459_s29  }
  0x34   :  { %451 = dma.done.wait [#allocation4], 64  }
  0x35   :  { %452 = vsyncadd [#allocation4], 4294967232 }
  0x36   :  { %453 = dma.done.wait [#allocation7], 1024  }
  0x37   :  { %454 = vsyncadd [#allocation7], 4294966272  ;;  %v464_v0 = vmov 0.0   ;;  %vm70_vm0 = vcmask 1041408   ;;  %v68_v1 = vld [vmem:[#allocation3] sm:$0x3] }
  0x38   :  { %66 = vst [vmem:[#allocation2] sm:$0x3] %v464_v0  ;;  %v69_v2 = vld [vmem:[#allocation3 + $0x2] sm:$0x3]  ;;  %v71_v3 = vsel %vm70_vm0, %v68_v1, 0.0  ;;  %vm87_vm1 = vcmask 1041409  }
  0x39   :  { %v78_v4 = vsel %vm70_vm0, %v69_v2, 0.0  ;;  %v72_v5 = vrot.slane %v71_v3, 4  ;;  %v110_v18 = vld [vmem:[#allocation6] sm:$0xff]  ;;  %v111_v19 = vld [vmem:[#allocation6 + $0x8] sm:$0xff]  ;;  %v465_v20 = vmov 0.0|0.0   ;;  %v112_v24 = vld [vmem:[#allocation6 + $0x10] sm:$0xff] }
  0x3a   :  { %v79_v6 = vrot.slane %v78_v4, 4  ;;  %336 = vmatprep.subr.bf16.mxu0 %v465_v20  ;;  %v337_v21 = vpack.c.bf16 %v111_v19, %v110_v18  ;;  %342 = vmatprep.subr.bf16.mxu1 %v465_v20  ;;  %v113_v25 = vld [vmem:[#allocation6 + $0x18] sm:$0xff]  ;;  %vm466_vm2 = vmmov 0   ;;  %v196_v27 = vld [vmem:[#allocation8] sm:$0xff]  ;;  %v197_v28 = vld [vmem:[#allocation8 + $0x8] sm:$0xff]  ;;  %s467_s3 = smov 96  }
  0x3b   :  { %v73_v7 = vadd.f32 %v72_v5, %v71_v3  ;;  %v340_v26 = vpack.c.bf16 %v113_v25, %v112_v24  ;;  %322 = vmatprep.mubr.msk.f32.mxu0 %vm466_vm2, %v464_v0  ;;  %333 = vmatprep.mubr.msk.f32.mxu1 %vm466_vm2, %v464_v0  ;;  %v343_v29 = vpack.c.bf16 %v197_v28, %v196_v27  ;;  %s468_s28 = smov 64   ;;  %vm121_vm3 = vcmask 261120   ;;  %v198_v38 = vld [vmem:[#allocation8 + $0x10] sm:$0xff]  ;;  %v199_v39 = vld [vmem:[#allocation8 + $0x18] sm:$0xff]  ;;  %s469_s11 = smov [#allocation9]  }
  0x3c   :  { %v80_v8 = vadd.f32 %v79_v6, %v78_v4  ;;  %338 = vmatpush3.bf16.msra.mxu0 %v337_v21  ;;  %v346_v40 = vpack.c.bf16 %v199_v39, %v198_v38  ;;  %v300_v41 = vld [vmem:[%s565_s2] ss:$0 sm:$0xff]  ;;  %s290_s12 = sshll.u32 %s469_s11, 4  ;;  %vm282_vm4 = vcmask 254976   ;;  %s291_s12 = int_to_ptr.vmem [resolvable:$true] %s290_s12 }
  0x3d   :  { %v74_v9 = vrot.slane %v73_v7, 2  ;;  %339 = vmatprep.subr.bf16.mxu0 %v465_v20  ;;  %344 = vmatpush3.bf16.msra.mxu1 %v343_v29  ;;  %v302_v46 = vld [vmem:[%s567_s4] ss:$0 sm:$0xff]  ;;  %s429_s2 = scalar_lea.vmem %s291_s12, 32  ;;  %p434_p11 = scmp.lt.s32.totalorder %s291_s12, %s291_s12 }
  0x3e   :  { %v81_v10 = vrot.slane %v80_v8, 2  ;;  %345 = vmatprep.subr.bf16.mxu1 %v465_v20  ;;  %p430_p10 = scmp.ne.s32.totalorder %s291_s12, %s429_s2  ;;  %p435_p12 = scmp.lt.s32.totalorder %s429_s2, %s429_s2 }
  0x3f   :  { %v75_v11 = vadd.f32 %v74_v9, %v73_v7  ;;  %v67_v15 = vld [vmem:[#allocation2] sm:$0x3] }
  0x40   :  { %v82_v12 = vadd.f32 %v81_v10, %v80_v8  ;;  %341 = vmatpush3.bf16.msra.mxu0 %v340_v26  ;;  %p436_p13 = por %p435_p12, %p434_p11 }
  0x41   :  { %v76_v13 = vrot.slane %v75_v11, 1  ;;  %347 = vmatpush3.bf16.msra.mxu1 %v346_v40 }
  0x42   :  { %v83_v14 = vrot.slane %v82_v12, 1  ;;  %p437_p0 = pnand %p436_p13, %p430_p10 }
  0x43   :  { %v77_v16 = vadd.f32 %v76_v13, %v75_v11 }
  0x44   :  { %v84_v17 = vadd.f32 %v83_v14, %v82_v12 }
  0x46   :  { %v88_v22 = vsel %vm87_vm1, %v84_v17, %v77_v16 }
  0x47   :  { %v90_v23 = vadd.f32 %v88_v22, %v67_v15 }
  0x49   :  { %91 = vst [vmem:[#allocation2] sm:$0x3] %v90_v23 }
  0x50   :  { %v95_v30 = vld [vmem:[#allocation2] sm:$0x3] }
  0x51   :  { %97 = vrot.lane.b32.xlu0 %v95_v30, %s467_s3  ;;  %105 = vrot.lane.b32.xlu1 %v95_v30, %s461_s1 }
  0x55   :  { %101 = vrot.lane.b32.xlu0 %v95_v30, %s468_s28 }
  0xc3   :  { %v98_v31 = vpop.permute.xlu0 %97  ;;  %v106_v34 = vpop.permute.xlu1 %105 }
  0xc4   :  { %v100_v32 = vadd.f32 %v98_v31, %v95_v30 }
  0xc7   :  { %v102_v33 = vpop.permute.xlu0 %101 }
  0xc8   :  { %v104_v35 = vadd.f32 %v102_v33, %v100_v32 }
  0xca   :  { %v108_v36 = vadd.f32 %v106_v34, %v104_v35 }
  0xcc   :  { %v109_v37 = vmul.f32 0.125, %v108_v36 }
  0xce   :  { %323 = vmatmul.mubr.msk.f32.vlgmr.msra.gmra.mrb[0].mxu0 %vm121_vm3, %v109_v37 }
 0x1a1   :  { %v191_v42 = vpop.f32.mrb[0].mxu0 }
 0x1a2   :  { %v192_v43 = vadd.f32 %v300_v41, %v191_v42  ;;  %v324_v44 = vpop.f32.mrb[1].mxu0 }
 0x1a4   :  { %v195_v45 = vmax.f32 %v192_v43, 0.0 }
 0x1a6   :  { %334 = vmatmul.mubr.msk.f32.vlgmr.msra.gmra.mrb[0].mxu1 %vm121_vm3, %v195_v45 }
 0x279   :  { %v276_v47 = vpop.f32.mrb[0].mxu1 }
 0x27a   :  { %v277_v48 = vadd.f32 %v302_v46, %v276_v47  ;;  %v335_v49 = vpop.f32.mrb[1].mxu1 }
 0x27c   :  { %361 = vtanh.f32 %v277_v48 }
 0x286   :  { %v362_v50 = vpop.eup %361 }
 0x287   :  { %v281_v51 = vmax.f32 %v362_v50, 0.0 }
 0x289   :  { %283 = vst.msk [vmem:[#allocation9] sm:$0x3] %vm282_vm4, %v281_v51 }
 0x28a   :  { %440 = shalt.err (!%p437_p0)
}
 0x28b   :  { %s441_s14 = scalar_lea.hbm %s568_s5, 32 }
 0x28c   :  { %p442_p1 = scmp.ne.s32.totalorder %s568_s5, %s441_s14  ;;  %p445_p2 = scmp.lt.u32.totalorder %s441_s14, %s568_s5 }
 0x28e   :  { %p447_p3 = pnand %p445_p2, %p442_p1 }
 0x290   :  { %450 = shalt.err (!%p447_p3)
}
 0x291   :  { %293 = dma.vmem_to_hbm [thread:$0]  %s291_s12, 32, %s568_s5, [#allocation5]  }
 0x292   :  { %455 = dma.done.wait [#allocation5], 32  }
 0x293   :  { %456 = vsyncadd [#allocation5], 4294967264 }
 0x294   :  { %297 = vsyncpa [#allocation4], 1 }
 0x295   :  { %298 = vsyncpa [#allocation7], 1 }
 0x296   :  { %299 = vsyncpa [#allocation5], 1 }

</bundles_post_ra>
